<compile_context>
chip_gen: v7x
topology: tpu7x:2x2x1
jax: 0.10.0
libtpu: 0.0.40
codegen_flags: <defaults>
</compile_context>

<pallas_src>
import jax
import jax.numpy as jnp
from jax.experimental import pallas as pl
from jax.experimental.pallas import tpu as pltpu

INPUT_SIZE = 784
NUM_CLASSES = 10
LANE = 128        # lane width: pad feature dims to this
ROW_ALIGN = 16    # bf16 packs 16 rows per sublane tile; align batch rows to this


def _round_up(x, m):
    return ((x + m - 1) // m) * m


def _fused_mlp_kernel(x_ref, w1_ref, b1_ref, w2_ref, b2_ref, w3_ref, b3_ref,
                      o_ref):
    # One batch-tile of the whole MLP. Weights/biases are resident full-array
    # VMEM blocks; intermediates never leave vregs/VMEM.
    # bf16 MXU inputs, f32 accumulation, f32 elementwise epilogue (v5e-safe).
    h = jnp.dot(x_ref[...], w1_ref[...], preferred_element_type=jnp.float32)
    h = jnp.maximum(h + b1_ref[...], 0.0).astype(jnp.bfloat16)
    h = jnp.dot(h, w2_ref[...], preferred_element_type=jnp.float32)
    h = jnp.maximum(h + b2_ref[...], 0.0).astype(jnp.bfloat16)
    out = jnp.dot(h, w3_ref[...], preferred_element_type=jnp.float32)
    o_ref[...] = (out + b3_ref[...]).astype(o_ref.dtype)


def fused_mlp(x2d, params, *, tile_n, num_tiles):
    """x2d: (n_rows, 784) bf16, n_rows % 16 == 0 (last grid tile may be partial).
    Returns (n_rows, 128) bf16 padded logits."""
    n_rows, d_in = x2d.shape
    (w1, b1), (w2, b2), (w3, b3) = params
    d_h1 = w1.shape[1]
    d_h2 = w2.shape[1]
    d_out = w3.shape[1]

    flops = 2 * n_rows * (d_in * d_h1 + d_h1 * d_h2 + d_h2 * d_out)
    bytes_accessed = int(
        x2d.size * x2d.dtype.itemsize
        + sum(a.size * a.dtype.itemsize for a in (w1, b1, w2, b2, w3, b3))
        + n_rows * d_out * 2)

    return pl.pallas_call(
        _fused_mlp_kernel,
        out_shape=jax.ShapeDtypeStruct((n_rows, d_out), jnp.bfloat16),
        grid=(num_tiles,),
        in_specs=[
            pl.BlockSpec((tile_n, d_in), lambda i: (i, 0)),   # x row-tile (bf16)
            pl.BlockSpec((d_in, d_h1), lambda i: (0, 0)),     # W1^T (full, bf16)
            pl.BlockSpec((1, d_h1), lambda i: (0, 0)),        # b1 (f32)
            pl.BlockSpec((d_h1, d_h2), lambda i: (0, 0)),     # W2^T (full, bf16)
            pl.BlockSpec((1, d_h2), lambda i: (0, 0)),        # b2 (f32)
            pl.BlockSpec((d_h2, d_out), lambda i: (0, 0)),    # W3^T (full, bf16)
            pl.BlockSpec((1, d_out), lambda i: (0, 0)),       # b3 (f32)
        ],
        out_specs=pl.BlockSpec((tile_n, d_out), lambda i: (i, 0)),
        compiler_params=pltpu.CompilerParams(
            dimension_semantics=("parallel",),   # shard batch tiles over TCs (v7x)
            vmem_limit_bytes=48 * 1024 * 1024,
        ),
        cost_estimate=pl.CostEstimate(
            flops=flops, transcendentals=0, bytes_accessed=bytes_accessed),
    )(x2d, w1, b1, w2, b2, w3, b3)


def init_overfitnet_params(key, layer_sizes=(100, 100), input_size=INPUT_SIZE,
                           num_classes=NUM_CLASSES):
    """PyTorch-style uniform init; weights stored transposed (in, out),
    zero-padded to 128-lane widths, cast to bf16; biases kept f32 as (1, out_pad)."""
    sizes = [input_size] + list(layer_sizes) + [num_classes]
    params = []
    for i in range(len(sizes) - 1):
        fan_in, fan_out = sizes[i], sizes[i + 1]
        key, kw, kb = jax.random.split(key, 3)
        bound = 1.0 / (fan_in ** 0.5)
        w_t = jax.random.uniform(kw, (fan_in, fan_out), jnp.float32, -bound, bound)
        b = jax.random.uniform(kb, (fan_out,), jnp.float32, -bound, bound)
        # First layer keeps in=784 (full-array block); hidden in-dims pad to 128
        # so they match the previous layer's padded output width.
        in_pad = fan_in if i == 0 else _round_up(fan_in, LANE)
        out_pad = _round_up(fan_out, LANE)
        w_pad = (jnp.zeros((in_pad, out_pad), jnp.float32)
                 .at[:fan_in, :fan_out].set(w_t).astype(jnp.bfloat16))
        b_pad = jnp.zeros((1, out_pad), jnp.float32).at[0, :fan_out].set(b)
        params.append((w_pad, b_pad))
    return params


def _choose_tiling(n, max_tile_n):
    """Row-align to 16, then pick the smallest tile count that keeps tiles
    under max_tile_n while giving v7x's two TensorCores work (>=2 tiles when
    the batch has more than one 16-row group). The last tile may be partial."""
    n_al = _round_up(max(n, 1), ROW_ALIGN)
    groups = n_al // ROW_ALIGN
    num_tiles = max(pl.cdiv(n_al, max_tile_n), min(2, groups))
    tile_n = pl.cdiv(groups, num_tiles) * ROW_ALIGN
    num_tiles = pl.cdiv(n_al, tile_n)
    return n_al, tile_n, num_tiles


def overfitnet_forward(params, x, *, max_tile_n=2048):
    """x: (N, C, H, W) NCHW, flattened to (N, 784) like torch.flatten(x, 1)."""
    n = x.shape[0]
    h = x.reshape(n, -1).astype(jnp.bfloat16)
    assert h.shape[1] == INPUT_SIZE, h.shape
    n_al, tile_n, num_tiles = _choose_tiling(n, max_tile_n)
    if n_al != n:
        # <= 15 pad rows; under jit this fuses with the bf16 cast (no extra
        # full HBM pass over x).
        h = jnp.pad(h, ((0, n_al - n), (0, 0)))
    out_padded = fused_mlp(h, params, tile_n=tile_n, num_tiles=num_tiles)
    # Slice padded batch rows / padded class lanes off; cast logits to f32.
    return out_padded[:n, :NUM_CLASSES].astype(jnp.float32)


if __name__ == "__main__":
    key = jax.random.PRNGKey(0)
    kp, kx = jax.random.split(key)

    params = init_overfitnet_params(kp, layer_sizes=(100, 100))

    # Small deterministic input consistent with the 784-feature flatten.
    x = jax.random.normal(kx, (2, 1, 28, 28), jnp.float32)

    fwd = jax.jit(overfitnet_forward)
    out = fwd(params, x)
    jax.block_until_ready(out)

    assert out.shape == (2, NUM_CLASSES), out.shape
    assert out.dtype == jnp.float32

    # Reference check in plain JAX (same math as the PyTorch module), using the
    # un-padded slices of the stored params. Tolerance loosened for bf16
    # activations/weights in the kernel.
    (w1, b1), (w2, b2), (w3, b3) = params
    h_ref = x.reshape(2, -1)
    h_ref = jnp.maximum(h_ref @ w1[:784, :100].astype(jnp.float32) + b1[0, :100], 0.0)
    h_ref = jnp.maximum(h_ref @ w2[:100, :100].astype(jnp.float32) + b2[0, :100], 0.0)
    ref = h_ref @ w3[:100, :10].astype(jnp.float32) + b3[0, :10]
    assert jnp.allclose(out, ref, atol=3e-2, rtol=3e-2), \
        float(jnp.max(jnp.abs(out - ref)))

    print("KERNEL_OK")
</pallas_src>

<mosaic_0001>
module attributes {stable_mosaic.version = 11 : i64} {
  func.func @_fused_mlp_kernel(%arg0: i32, %arg1: memref<16x784xbf16, #tpu.memory_space<vmem>>, %arg2: memref<784x128xbf16, #tpu.memory_space<vmem>>, %arg3: memref<1x128xf32, #tpu.memory_space<vmem>>, %arg4: memref<128x128xbf16, #tpu.memory_space<vmem>>, %arg5: memref<1x128xf32, #tpu.memory_space<vmem>>, %arg6: memref<128x128xbf16, #tpu.memory_space<vmem>>, %arg7: memref<1x128xf32, #tpu.memory_space<vmem>>, %arg8: memref<16x128xbf16, #tpu.memory_space<vmem>>) attributes {dimension_semantics = [#tpu.dimension_semantics<parallel>], iteration_bounds = array<i64: 1>, scalar_prefetch = 0 : i64, scratch_operands = 0 : i64, tpu.core_type = #tpu.core_type<tc>, window_params = [{transform_indices = @transform_0, window_bounds = array<i64: 16, 784>}, {pipeline_mode = #tpu.pipeline_mode<synchronous>, transform_indices = @transform_1, window_bounds = array<i64: 784, 128>}, {pipeline_mode = #tpu.pipeline_mode<synchronous>, transform_indices = @transform_2, window_bounds = array<i64: 1, 128>}, {pipeline_mode = #tpu.pipeline_mode<synchronous>, transform_indices = @transform_3, window_bounds = array<i64: 128, 128>}, {pipeline_mode = #tpu.pipeline_mode<synchronous>, transform_indices = @transform_4, window_bounds = array<i64: 1, 128>}, {pipeline_mode = #tpu.pipeline_mode<synchronous>, transform_indices = @transform_5, window_bounds = array<i64: 128, 128>}, {pipeline_mode = #tpu.pipeline_mode<synchronous>, transform_indices = @transform_6, window_bounds = array<i64: 1, 128>}, {transform_indices = @transform_7, window_bounds = array<i64: 16, 128>}]} {
    %c0 = arith.constant 0 : index
    %c0_0 = arith.constant 0 : index
    %0 = vector.load %arg1[%c0, %c0_0] : memref<16x784xbf16, #tpu.memory_space<vmem>>, vector<16x784xbf16>
    %c0_1 = arith.constant 0 : index
    %c0_2 = arith.constant 0 : index
    %1 = vector.load %arg2[%c0_1, %c0_2] : memref<784x128xbf16, #tpu.memory_space<vmem>>, vector<784x128xbf16>
    %cst = arith.constant dense<0.000000e+00> : vector<16x128xf32>
    %2 = tpu.matmul %0, %1, %cst {dimension_numbers = #tpu.dot_dimension_numbers<[1], [0], [0], [1], [0, 0, 1, 1], [], []>} : vector<16x784xbf16>, vector<784x128xbf16>, vector<16x128xf32> -> vector<16x128xf32>
    %c0_3 = arith.constant 0 : index
    %c0_4 = arith.constant 0 : index
    %3 = vector.load %arg3[%c0_3, %c0_4] : memref<1x128xf32, #tpu.memory_space<vmem>>, vector<1x128xf32>
    %4 = vector.broadcast %3 : vector<1x128xf32> to vector<16x128xf32>
    %5 = arith.addf %2, %4 : vector<16x128xf32>
    %cst_5 = arith.constant 0.000000e+00 : f32
    %6 = vector.broadcast %cst_5 : f32 to vector<16x128xf32>
    %7 = arith.maximumf %5, %6 : vector<16x128xf32>
    %8 = arith.truncf %7 : vector<16x128xf32> to vector<16x128xbf16>
    %c0_6 = arith.constant 0 : index
    %c0_7 = arith.constant 0 : index
    %9 = vector.load %arg4[%c0_6, %c0_7] : memref<128x128xbf16, #tpu.memory_space<vmem>>, vector<128x128xbf16>
    %cst_8 = arith.constant dense<0.000000e+00> : vector<16x128xf32>
    %10 = tpu.matmul %8, %9, %cst_8 {dimension_numbers = #tpu.dot_dimension_numbers<[1], [0], [0], [1], [0, 0, 1, 1], [], []>} : vector<16x128xbf16>, vector<128x128xbf16>, vector<16x128xf32> -> vector<16x128xf32>
    %c0_9 = arith.constant 0 : index
    %c0_10 = arith.constant 0 : index
    %11 = vector.load %arg5[%c0_9, %c0_10] : memref<1x128xf32, #tpu.memory_space<vmem>>, vector<1x128xf32>
    %12 = vector.broadcast %11 : vector<1x128xf32> to vector<16x128xf32>
    %13 = arith.addf %10, %12 : vector<16x128xf32>
    %cst_11 = arith.constant 0.000000e+00 : f32
    %14 = vector.broadcast %cst_11 : f32 to vector<16x128xf32>
    %15 = arith.maximumf %13, %14 : vector<16x128xf32>
    %16 = arith.truncf %15 : vector<16x128xf32> to vector<16x128xbf16>
    %c0_12 = arith.constant 0 : index
    %c0_13 = arith.constant 0 : index
    %17 = vector.load %arg6[%c0_12, %c0_13] : memref<128x128xbf16, #tpu.memory_space<vmem>>, vector<128x128xbf16>
    %cst_14 = arith.constant dense<0.000000e+00> : vector<16x128xf32>
    %18 = tpu.matmul %16, %17, %cst_14 {dimension_numbers = #tpu.dot_dimension_numbers<[1], [0], [0], [1], [0, 0, 1, 1], [], []>} : vector<16x128xbf16>, vector<128x128xbf16>, vector<16x128xf32> -> vector<16x128xf32>
    %c0_15 = arith.constant 0 : index
    %c0_16 = arith.constant 0 : index
    %19 = vector.load %arg7[%c0_15, %c0_16] : memref<1x128xf32, #tpu.memory_space<vmem>>, vector<1x128xf32>
    %20 = vector.broadcast %19 : vector<1x128xf32> to vector<16x128xf32>
    %21 = arith.addf %18, %20 : vector<16x128xf32>
    %22 = arith.truncf %21 : vector<16x128xf32> to vector<16x128xbf16>
    %c0_17 = arith.constant 0 : index
    %c0_18 = arith.constant 0 : index
    %23 = vector.load %arg8[%c0_17, %c0_18] : memref<16x128xbf16, #tpu.memory_space<vmem>>, vector<16x128xbf16>
    tpu.vector_store %arg8[%c0_17, %c0_18], %22 {strides = array<i32>} : memref<16x128xbf16, #tpu.memory_space<vmem>>, vector<16x128xbf16>,
    return
  }
  func.func @transform_0(%arg0: i32) -> (i32, i32) {
    %c0_i32 = arith.constant 0 : i32
    %c0_i32_0 = arith.constant 0 : i32
    return %arg0, %c0_i32 : i32, i32
  }
  func.func @transform_1(%arg0: i32) -> (i32, i32) {
    %c0_i32 = arith.constant 0 : i32
    %c0_i32_0 = arith.constant 0 : i32
    %c0_i32_1 = arith.constant 0 : i32
    return %c0_i32, %c0_i32_0 : i32, i32
  }
  func.func @transform_2(%arg0: i32) -> (i32, i32) {
    %c0_i32 = arith.constant 0 : i32
    %c0_i32_0 = arith.constant 0 : i32
    %c0_i32_1 = arith.constant 0 : i32
    return %c0_i32, %c0_i32_0 : i32, i32
  }
  func.func @transform_3(%arg0: i32) -> (i32, i32) {
    %c0_i32 = arith.constant 0 : i32
    %c0_i32_0 = arith.constant 0 : i32
    %c0_i32_1 = arith.constant 0 : i32
    return %c0_i32, %c0_i32_0 : i32, i32
  }
  func.func @transform_4(%arg0: i32) -> (i32, i32) {
    %c0_i32 = arith.constant 0 : i32
    %c0_i32_0 = arith.constant 0 : i32
    %c0_i32_1 = arith.constant 0 : i32
    return %c0_i32, %c0_i32_0 : i32, i32
  }
  func.func @transform_5(%arg0: i32) -> (i32, i32) {
    %c0_i32 = arith.constant 0 : i32
    %c0_i32_0 = arith.constant 0 : i32
    %c0_i32_1 = arith.constant 0 : i32
    return %c0_i32, %c0_i32_0 : i32, i32
  }
  func.func @transform_6(%arg0: i32) -> (i32, i32) {
    %c0_i32 = arith.constant 0 : i32
    %c0_i32_0 = arith.constant 0 : i32
    %c0_i32_1 = arith.constant 0 : i32
    return %c0_i32, %c0_i32_0 : i32, i32
  }
  func.func @transform_7(%arg0: i32) -> (i32, i32) {
    %c0_i32 = arith.constant 0 : i32
    %c0_i32_0 = arith.constant 0 : i32
    return %arg0, %c0_i32 : i32, i32
  }
}

</mosaic_0001>

<bundles_post_ra>
// kernel: overfitnet_forward.1
= control target key start
LH: loop header
LB: loop body
LE: loop exit
PB: predicated region body
PF: predicated region fallthrough
CT: control target
= control target key end

     0   :  { %12 = vsyncpa [#allocation3], 0  ;;  %s1217_s24 = smov [#allocation2]   ;;  %s1378_s0 = inlined_call_operand.vmem [shape: bf16[16,784], index: 0, kind: input, shape index: {}]   ;;  %s1379_s1 = inlined_call_operand.hbm [shape: bf16[784,128], index: 1, kind: input, shape index: {}]   ;;  %s1380_s2 = inlined_call_operand.vmem [shape: f32[1,128], index: 2, kind: input, shape index: {}]   ;;  %s1381_s3 = inlined_call_operand.vmem [shape: bf16[128,128], index: 3, kind: input, shape index: {}]   ;;  %s1382_s4 = inlined_call_operand.vmem [shape: f32[1,128], index: 4, kind: input, shape index: {}]   ;;  %s1383_s5 = inlined_call_operand.vmem [shape: bf16[128,128], index: 5, kind: input, shape index: {}]   ;;  %s1384_s6 = inlined_call_operand.vmem [shape: f32[1,128], index: 6, kind: input, shape index: {}]   ;;  %s1385_s7 = inlined_call_operand.vmem [shape: bf16[16,128], index: 7, kind: output, shape index: {}]  }
   0x1   :  { %s20_s25 = sshll.u32 %s1217_s24, 4  ;;  %s1193_s28 = scalar_lea.hbm %s1379_s1, 6272  ;;  %s21_s25 = int_to_ptr.vmem [resolvable:$true] %s20_s25 }
   0x2   :  { %p1194_p0 = scmp.ne.s32.totalorder %s1379_s1, %s1193_s28  ;;  %p1197_p1 = scmp.lt.u32.totalorder %s1193_s28, %s1379_s1 }
   0x4   :  { %p1199_p2 = pnand %p1197_p1, %p1194_p0 }
   0x6   :  { %1202 = shalt.err (!%p1199_p2)
}
   0x7   :  { %s1203_s10 = scalar_lea.vmem %s21_s25, 6272  ;;  %p1208_p4 = scmp.lt.s32.totalorder %s21_s25, %s21_s25 }
   0x8   :  { %p1204_p3 = scmp.ne.s32.totalorder %s21_s25, %s1203_s10  ;;  %p1209_p5 = scmp.lt.s32.totalorder %s1203_s10, %s1203_s10 }
   0xa   :  { %p1210_p6 = por %p1209_p5, %p1208_p4 }
   0xc   :  { %p1211_p7 = pnand %p1210_p6, %p1204_p3 }
   0xe   :  { %1214 = shalt.err (!%p1211_p7)
}
   0xf   :  { %s1218_s11 = smov 64   ;;  %s1219_s12 = smov 4  }
  0x10   :  { %26 = dma.hbm_to_vmem [thread:$0]  %s1379_s1, 6272, %s21_s25, [#allocation3], %s1218_s11, %s1218_s11, %s1219_s12  }
  0x11   :  { %1215 = dma.done.wait [#allocation3], 6272  }
  0x12   :  { %1216 = vsyncadd [#allocation3], 4294961024  ;;  %v1118_v0 = vld [vmem:[#allocation2 + $0x40] sm:$0xff]   ;;  %v1122_v4 = vld [vmem:[#allocation2 + $0x48] sm:$0xff]   ;;  %v1220_v38 = vmov 0.0   ;;  %vm1221_vm0 = vmmov 0  }
  0x13   :  { %v1119_v1 = vld [vmem:[#allocation2] sm:$0xff]   ;;  %981 = vmatprep.subr.bf16.mxu0 %v1118_v0  ;;  %v1123_v5 = vld [vmem:[#allocation2 + $0x8] sm:$0xff]   ;;  %v1126_v8 = vld [vmem:[#allocation2 + $0x50] sm:$0xff]   ;;  %vm483_vm1 = vcmask 130048  }
  0x14   :  { %v1120_v2 = vld [vmem:[#allocation2 + $0xc0] sm:$0xff]   ;;  %982 = vmatpush3.bf16.msra.mxu0 %v1119_v1  ;;  %v1124_v6 = vld [vmem:[#allocation2 + $0xc8] sm:$0xff]   ;;  %v1127_v9 = vld [vmem:[#allocation2 + $0x10] sm:$0xff]  }
  0x15   :  { %v1121_v3 = vld [vmem:[#allocation2 + $0x80] sm:$0xff]   ;;  %1003 = vmatprep.subr.bf16.mxu1 %v1120_v2  ;;  %983 = vmatprep.subr.bf16.mxu0 %v1122_v4  ;;  %v1125_v7 = vld [vmem:[#allocation2 + $0x88] sm:$0xff]   ;;  %v1128_v10 = vld [vmem:[#allocation2 + $0xd0] sm:$0xff]  }
  0x16   :  { %1004 = vmatpush3.bf16.msra.mxu1 %v1121_v3  ;;  %v1129_v11 = vld [vmem:[#allocation2 + $0x90] sm:$0xff]   ;;  %v1130_v12 = vld [vmem:[#allocation2 + $0x58] sm:$0xff]   ;;  %v1134_v16 = vld [vmem:[#allocation2 + $0x60] sm:$0xff]  }
  0x17   :  { %1005 = vmatprep.subr.bf16.mxu1 %v1124_v6  ;;  %v1131_v13 = vld [vmem:[#allocation2 + $0x18] sm:$0xff]   ;;  %v1135_v17 = vld [vmem:[#allocation2 + $0x20] sm:$0xff]   ;;  %v1138_v20 = vld [vmem:[#allocation2 + $0x68] sm:$0xff]  }
  0x18   :  { %984 = vmatpush3.bf16.msra.mxu0 %v1123_v5  ;;  %v1132_v14 = vld [vmem:[#allocation2 + $0xd8] sm:$0xff]   ;;  %v1136_v18 = vld [vmem:[#allocation2 + $0xe0] sm:$0xff]   ;;  %v1139_v21 = vld [vmem:[#allocation2 + $0x28] sm:$0xff]  }
  0x19   :  { %985 = vmatprep.subr.bf16.mxu0 %v1126_v8  ;;  %v1133_v15 = vld [vmem:[#allocation2 + $0x98] sm:$0xff]   ;;  %v1137_v19 = vld [vmem:[#allocation2 + $0xa0] sm:$0xff]   ;;  %v1140_v22 = vld [vmem:[#allocation2 + $0xe8] sm:$0xff]  }
  0x1a   :  { %1006 = vmatpush3.bf16.msra.mxu1 %v1125_v7  ;;  %v1141_v23 = vld [vmem:[#allocation2 + $0xa8] sm:$0xff]   ;;  %v1142_v24 = vld [vmem:[#allocation2 + $0x70] sm:$0xff]   ;;  %v1146_v28 = vld [vmem:[#allocation2 + $0x78] sm:$0xff]  }
  0x1b   :  { %1007 = vmatprep.subr.bf16.mxu1 %v1128_v10  ;;  %v1143_v25 = vld [vmem:[#allocation2 + $0x30] sm:$0xff]   ;;  %v1147_v29 = vld [vmem:[#allocation2 + $0x38] sm:$0xff]   ;;  %v1151_v32 = vld [vmem:[%s1378_s0 + $0x4] ss:$28 sps:$4 sm:$0xff]  }
  0x1c   :  { %986 = vmatpush3.bf16.msra.mxu0 %v1127_v9  ;;  %v1144_v26 = vld [vmem:[#allocation2 + $0xf0] sm:$0xff]   ;;  %v1148_v30 = vld [vmem:[#allocation2 + $0xf8] sm:$0xff]   ;;  %519 = vmatprep.mubr.bf16.mxu0 %v1151_v32  ;;  %v1153_v34 = vld [vmem:[#allocation2 + $0x140] sm:$0xff]  }
  0x1d   :  { %987 = vmatprep.subr.bf16.mxu0 %v1130_v12  ;;  %v1145_v27 = vld [vmem:[#allocation2 + $0xb0] sm:$0xff]   ;;  %v1149_v31 = vld [vmem:[%s1378_s0] ss:$28 sps:$4 sm:$0xff]   ;;  %v1154_v35 = vld [vmem:[%s1378_s0 + $0x8] ss:$28 sps:$4 sm:$0xff]  }
  0x1e   :  { %1008 = vmatpush3.bf16.msra.mxu1 %v1129_v11  ;;  %v1152_v33 = vld [vmem:[#allocation2 + $0xb8] sm:$0xff]   ;;  %v1156_v36 = vld [vmem:[%s1378_s0 + $0xc] ss:$28 sps:$4 sm:$0xff]   ;;  %v1157_v37 = vld [vmem:[#allocation2 + $0x100] sm:$0xff]  }
  0x1f   :  { %1009 = vmatprep.subr.bf16.mxu1 %v1132_v14  ;;  %560 = vmatprep.mubr.bf16.mxu1 %v1156_v36  ;;  %v1158_v39 = vld [vmem:[#allocation2 + $0x148] sm:$0xff]   ;;  %v1160_v41 = vld [vmem:[#allocation2 + $0x150] sm:$0xff]   ;;  %v1162_v43 = vld [vmem:[#allocation2 + $0x158] sm:$0xff]  }
  0x20   :  { %988 = vmatpush3.bf16.msra.mxu0 %v1131_v13  ;;  %v1159_v40 = vld [vmem:[#allocation2 + $0x108] sm:$0xff]   ;;  %v1161_v42 = vld [vmem:[#allocation2 + $0x110] sm:$0xff]   ;;  %v1163_v44 = vld [vmem:[#allocation2 + $0x118] sm:$0xff]  }
  0x21   :  { %989 = vmatprep.subr.bf16.mxu0 %v1134_v16  ;;  %v1164_v45 = vld [vmem:[#allocation2 + $0x160] sm:$0xff]   ;;  %v1166_v47 = vld [vmem:[#allocation2 + $0x168] sm:$0xff]   ;;  %v1175_v50 = vld [vmem:[%s1378_s0 + $0x14] ss:$28 sps:$4 sm:$0xff]  }
  0x22   :  { %1010 = vmatpush3.bf16.msra.mxu1 %v1133_v15  ;;  %v1165_v46 = vld [vmem:[#allocation2 + $0x120] sm:$0xff]   ;;  %v1167_v49 = vld [vmem:[#allocation2 + $0x128] sm:$0xff]   ;;  %v1168_v51 = vld [vmem:[#allocation2 + $0x170] sm:$0xff]  }
  0x23   :  { %1011 = vmatprep.subr.bf16.mxu1 %v1136_v18  ;;  %v1172_v48 = vld [vmem:[#allocation2 + $0x180] sm:$0xff]   ;;  %v1176_v52 = vld [vmem:[%s1378_s0 + $0x18] ss:$28 sps:$4 sm:$0xff]   ;;  %v1173_v56 = vld [vmem:[%s1378_s0 + $0x10] ss:$28 sps:$4 sm:$0xff]  }
  0x24   :  { %990 = vmatpush3.bf16.msra.mxu0 %v1135_v17  ;;  %v1169_v53 = vld [vmem:[#allocation2 + $0x130] sm:$0xff]   ;;  %v1170_v54 = vld [vmem:[#allocation2 + $0x178] sm:$0xff]   ;;  %v1177_v57 = vld [vmem:[%s1381_s3] sm:$0xff]  }
  0x25   :  { %991 = vmatprep.subr.bf16.mxu0 %v1138_v20  ;;  %v1171_v55 = vld [vmem:[#allocation2 + $0x138] sm:$0xff]   ;;  %v1178_v58 = vld [vmem:[%s1381_s3 + $0x8] sm:$0xff]   ;;  %v1179_v59 = vld [vmem:[%s1381_s3 + $0x10] sm:$0xff]  }
  0x26   :  { %1012 = vmatpush3.bf16.msra.mxu1 %v1137_v19  ;;  %v1180_v60 = vld [vmem:[%s1381_s3 + $0x18] sm:$0xff]   ;;  %v1181_v61 = vld [vmem:[%s1381_s3 + $0x20] sm:$0xff]   ;;  %v1182_v62 = vld [vmem:[%s1381_s3 + $0x28] sm:$0xff]  }
  0x27   :  { %1013 = vmatprep.subr.bf16.mxu1 %v1140_v22  ;;  %v1183_v63 = vld [vmem:[%s1381_s3 + $0x30] sm:$0xff]   ;;  %v1184_v0 = vld [vmem:[%s1381_s3 + $0x38] sm:$0xff]   ;;  %v1185_v1 = vld [vmem:[%s1383_s5] sm:$0xff]  }
  0x28   :  { %992 = vmatpush3.bf16.msra.mxu0 %v1139_v21  ;;  %v1186_v2 = vld [vmem:[%s1383_s5 + $0x8] sm:$0xff]   ;;  %v1187_v3 = vld [vmem:[%s1383_s5 + $0x10] sm:$0xff]   ;;  %v1188_v4 = vld [vmem:[%s1383_s5 + $0x18] sm:$0xff]  }
  0x29   :  { %993 = vmatprep.subr.bf16.mxu0 %v1142_v24  ;;  %v1189_v5 = vld [vmem:[%s1383_s5 + $0x20] sm:$0xff]   ;;  %v1190_v6 = vld [vmem:[%s1383_s5 + $0x28] sm:$0xff]  }
  0x2a   :  { %1014 = vmatpush3.bf16.msra.mxu1 %v1141_v23  ;;  %v896_v8 = vld [vmem:[%s1380_s2] ss:$0 sm:$0xff] }
  0x2b   :  { %1015 = vmatprep.subr.bf16.mxu1 %v1144_v26 }
  0x2c   :  { %994 = vmatpush3.bf16.msra.mxu0 %v1143_v25 }
  0x2d   :  { %995 = vmatprep.subr.bf16.mxu0 %v1146_v28 }
  0x2e   :  { %1016 = vmatpush3.bf16.msra.mxu1 %v1145_v27 }
  0x2f   :  { %1017 = vmatprep.subr.bf16.mxu1 %v1148_v30 }
  0x30   :  { %996 = vmatpush3.bf16.msra.mxu0 %v1147_v29 }
  0x31   :  { %1025 = vmatprep.subr.bf16.mxu0 %v1153_v34 }
  0x32   :  { %1018 = vmatpush3.bf16.msra.mxu1 %v1152_v33 }
  0x33   :  { %520 = vmatmul.mubr.bf16.vlgmr.msra.gmra.mrb[0].mxu0 %v1149_v31  ;;  %1067 = vmatprep.subr.bf16.mxu1 %v1220_v38 }
  0x34   :  { %1026 = vmatpush3.bf16.msra.mxu0 %v1157_v37  ;;  %601 = vmatprep.mubr.bf16.mxu0 %v1175_v50 }
  0x35   :  { %561 = vmatmul.mubr.bf16.vlgmr.msra.gmra.mrb[0].mxu1 %v1154_v35  ;;  %1027 = vmatprep.subr.bf16.mxu0 %v1158_v39 }
  0x36   :  { %1069 = vmatprep.mubr.msk.bf16.mxu1 %vm1221_vm0, %v1220_v38  ;;  %1068 = vmatpush3.bf16.msra.mxu1 %v1172_v48 }
  0x37   :  { %1073 = vmatprep.subr.bf16.mxu1 %v1220_v38 }
  0x38   :  { %1028 = vmatpush3.bf16.msra.mxu0 %v1159_v40 }
  0x39   :  { %1029 = vmatprep.subr.bf16.mxu0 %v1160_v41 }
  0x3c   :  { %1030 = vmatpush3.bf16.msra.mxu0 %v1161_v42  ;;  %v1191_v42 = vld [vmem:[%s1383_s5 + $0x30] sm:$0xff]  }
  0x3d   :  { %1031 = vmatprep.subr.bf16.mxu0 %v1162_v43  ;;  %1070 = vmatmul.mubr.msk.bf16.vlgmr.msra.gmra.mrb[4].mxu1 %vm483_vm1, %v1176_v52  ;;  %v1192_v43 = vld [vmem:[%s1383_s5 + $0x38] sm:$0xff]  }
  0x3e   :  { %1089 = vmatprep.mubr.msk.bf16.mxu1 %vm1221_vm0, %v1220_v38  ;;  %1074 = vmatpush3.bf16.msra.mxu1 %v1177_v57 }
  0x3f   :  { %1075 = vmatprep.subr.bf16.mxu1 %v1220_v38 }
  0x40   :  { %1032 = vmatpush3.bf16.msra.mxu0 %v1163_v44  ;;  %v954_v44 = vld [vmem:[%s1382_s4] ss:$0 sm:$0xff] }
  0x41   :  { %1033 = vmatprep.subr.bf16.mxu0 %v1164_v45 }
  0x42   :  { %1076 = vmatpush3.bf16.msra.mxu1 %v1178_v58 }
  0x43   :  { %1077 = vmatprep.subr.bf16.mxu1 %v1220_v38 }
  0x44   :  { %1034 = vmatpush3.bf16.msra.mxu0 %v1165_v46 }
  0x45   :  { %1035 = vmatprep.subr.bf16.mxu0 %v1166_v47 }
  0x46   :  { %1078 = vmatpush3.bf16.msra.mxu1 %v1179_v59 }
  0x47   :  { %1079 = vmatprep.subr.bf16.mxu1 %v1220_v38 }
  0x48   :  { %1036 = vmatpush3.bf16.msra.mxu0 %v1167_v49 }
  0x49   :  { %1037 = vmatprep.subr.bf16.mxu0 %v1168_v51 }
  0x4a   :  { %1080 = vmatpush3.bf16.msra.mxu1 %v1180_v60 }
  0x4b   :  { %1081 = vmatprep.subr.bf16.mxu1 %v1220_v38 }
  0x4c   :  { %1038 = vmatpush3.bf16.msra.mxu0 %v1169_v53 }
  0x4d   :  { %1039 = vmatprep.subr.bf16.mxu0 %v1170_v54 }
  0x4e   :  { %1082 = vmatpush3.bf16.msra.mxu1 %v1181_v61 }
  0x4f   :  { %1083 = vmatprep.subr.bf16.mxu1 %v1220_v38 }
  0x50   :  { %1040 = vmatpush3.bf16.msra.mxu0 %v1171_v55 }
  0x51   :  { %1093 = vmatprep.subr.bf16.mxu0 %v1220_v38 }
  0x52   :  { %1084 = vmatpush3.bf16.msra.mxu1 %v1182_v62 }
  0x53   :  { %602 = vmatmul.mubr.bf16.vlgmr.msra.gmra.mrb[4].mxu0 %v1173_v56  ;;  %1085 = vmatprep.subr.bf16.mxu1 %v1220_v38 }
  0x54   :  { %1109 = vmatprep.mubr.msk.bf16.mxu0 %vm1221_vm0, %v1220_v38  ;;  %1094 = vmatpush3.bf16.msra.mxu0 %v1185_v1 }
  0x55   :  { %1095 = vmatprep.subr.bf16.mxu0 %v1220_v38 }
  0x56   :  { %1086 = vmatpush3.bf16.msra.mxu1 %v1183_v63 }
  0x57   :  { %1087 = vmatprep.subr.bf16.mxu1 %v1220_v38 }
  0x58   :  { %1096 = vmatpush3.bf16.msra.mxu0 %v1186_v2 }
  0x59   :  { %1097 = vmatprep.subr.bf16.mxu0 %v1220_v38 }
  0x5a   :  { %1088 = vmatpush3.bf16.msra.mxu1 %v1184_v0 }
  0x5c   :  { %1098 = vmatpush3.bf16.msra.mxu0 %v1187_v3 }
  0x5d   :  { %1099 = vmatprep.subr.bf16.mxu0 %v1220_v38 }
  0x60   :  { %1100 = vmatpush3.bf16.msra.mxu0 %v1188_v4 }
  0x61   :  { %1101 = vmatprep.subr.bf16.mxu0 %v1220_v38 }
  0x64   :  { %1102 = vmatpush3.bf16.msra.mxu0 %v1189_v5 }
  0x65   :  { %1103 = vmatprep.subr.bf16.mxu0 %v1220_v38 }
  0x68   :  { %1104 = vmatpush3.bf16.msra.mxu0 %v1190_v6 }
  0x69   :  { %1105 = vmatprep.subr.bf16.mxu0 %v1220_v38 }
  0x6c   :  { %1106 = vmatpush3.bf16.msra.mxu0 %v1191_v42 }
  0x6d   :  { %1107 = vmatprep.subr.bf16.mxu0 %v1220_v38  ;;  %v963_v38 = vld [vmem:[%s1384_s6] ss:$0 sm:$0xff] }
  0x70   :  { %1108 = vmatpush3.bf16.msra.mxu0 %v1192_v43 }
 0x106   :  { %v997_v7 = vpop.f32.mrb[0].mxu0 }
 0x107   :  { %v998_v9 = vpop.f32.mrb[1].mxu0 }
 0x108   :  { %v999_v10 = vadd.f32 %v998_v9, %v997_v7  ;;  %v1000_v11 = vpop.f32.mrb[2].mxu0  ;;  %v1019_v12 = vpop.f32.mrb[0].mxu1 }
 0x109   :  { %v1001_v13 = vpop.f32.mrb[3].mxu0  ;;  %v1020_v16 = vpop.f32.mrb[1].mxu1 }
 0x10a   :  { %v522_v14 = vadd.f32 %v999_v10, %v896_v8  ;;  %v1002_v15 = vadd.f32 %v1001_v13, %v1000_v11  ;;  %v1021_v17 = vadd.f32 %v1020_v16, %v1019_v12  ;;  %v1022_v18 = vpop.f32.mrb[2].mxu1 }
 0x10b   :  { %v1023_v20 = vpop.f32.mrb[3].mxu1 }
 0x10c   :  { %v525_v19 = vadd.f32 %v1002_v15, %v896_v8  ;;  %v563_v21 = vadd.f32 %v1021_v17, %v522_v14  ;;  %v1024_v22 = vadd.f32 %v1023_v20, %v1022_v18 }
 0x10e   :  { %v566_v23 = vadd.f32 %v1024_v22, %v525_v19 }
 0x110   :  { %v644_v24 = vpop.f32.mrb[4].mxu1 }
 0x111   :  { %v1071_v25 = vpop.f32.mrb[5].mxu1 }
 0x112   :  { %v647_v26 = vpop.f32.mrb[6].mxu1 }
 0x113   :  { %v1072_v27 = vpop.f32.mrb[7].mxu1 }
 0x126   :  { %v1041_v28 = vpop.f32.mrb[4].mxu0 }
 0x127   :  { %v1042_v29 = vpop.f32.mrb[5].mxu0 }
 0x128   :  { %v1043_v30 = vadd.f32 %v1042_v29, %v1041_v28  ;;  %v1044_v31 = vpop.f32.mrb[6].mxu0 }
 0x129   :  { %v1045_v32 = vpop.f32.mrb[7].mxu0 }
 0x12a   :  { %v604_v33 = vadd.f32 %v1043_v30, %v563_v21  ;;  %v1046_v34 = vadd.f32 %v1045_v32, %v1044_v31 }
 0x12c   :  { %v645_v35 = vadd.f32 %v644_v24, %v604_v33  ;;  %v607_v36 = vadd.f32 %v1046_v34, %v566_v23 }
 0x12e   :  { %v648_v37 = vadd.f32 %v647_v26, %v607_v36  ;;  %v651_v39 = vmax.f32 %v645_v35, 0.0 }
 0x130   :  { %v652_v40 = vmax.f32 %v648_v37, 0.0 }
 0x132   :  { %v653_v41 = vpack.c.bf16 %v652_v40, %v651_v39 }
 0x134   :  { %1090 = vmatmul.mubr.bf16.vlgmr.msra.gmra.mrb[8].mxu1 %v653_v41 }
 0x207   :  { %v759_v45 = vpop.f32.mrb[8].mxu1 }
 0x208   :  { %v760_v46 = vadd.f32 %v954_v44, %v759_v45  ;;  %v1091_v47 = vpop.f32.mrb[9].mxu1 }
 0x209   :  { %v762_v48 = vpop.f32.mrb[10].mxu1 }
 0x20a   :  { %v763_v49 = vadd.f32 %v954_v44, %v762_v48  ;;  %v1092_v50 = vpop.f32.mrb[11].mxu1  ;;  %v766_v51 = vmax.f32 %v760_v46, 0.0 }
 0x20c   :  { %v767_v52 = vmax.f32 %v763_v49, 0.0 }
 0x20e   :  { %v768_v53 = vpack.c.bf16 %v767_v52, %v766_v51 }
 0x210   :  { %1110 = vmatmul.mubr.bf16.vlgmr.msra.gmra.mrb[8].mxu0 %v768_v53 }
 0x2e3   :  { %v874_v54 = vpop.f32.mrb[8].mxu0 }
 0x2e4   :  { %v1111_v55 = vpop.f32.mrb[9].mxu0  ;;  %v875_v57 = vadd.f32 %v963_v38, %v874_v54 }
 0x2e5   :  { %v877_v56 = vpop.f32.mrb[10].mxu0 }
 0x2e6   :  { %v878_v58 = vadd.f32 %v963_v38, %v877_v56  ;;  %v1112_v59 = vpop.f32.mrb[11].mxu0 }
 0x2e8   :  { %v979_v60 = vpack.c.bf16 %v878_v58, %v875_v57 }
 0x2ea   :  { %980 = vst [vmem:[%s1385_s7] sm:$0xff] %v979_v60  }
 0x2eb   :  { %895 = vsyncpa [#allocation3], 1 }

</bundles_post_ra>
